<compile_context>
chip_gen: v7x
topology: tpu7x:2x2x1
jax: 0.10.0
libtpu: 0.0.40
codegen_flags: <defaults>
</compile_context>

<pallas_src>
import functools

import jax
import jax.numpy as jnp
from jax import lax
from jax.experimental import pallas as pl
from jax.experimental.pallas import tpu as pltpu

# ---- SplineEmbedding hyper-parameters (SplineNet defaults) ----
ACTIONS = 8
EMB = 8
DELTA = 10
GRID_PTS = 2 * DELTA + 1            # 21 knot positions per action
TABLE = GRID_PTS * ACTIONS          # 168 embedding rows
KDIM = ACTIONS * GRID_PTS           # 168: block-diagonal contraction width
NDIM = ACTIONS * EMB                # 64: lane-dense output width
EPS_BN = 1e-5


def spline_embedding_kernel(x_ref, scale_ref, shift_ref, sel_ref, lane_g_ref,
                            tbl_ref, out_ref):
    """One batch tile: x (TN, A) f32 -> h (TN, A*E) f32 (lane-dense)."""
    x = x_ref[...]                                    # (TN, A) f32

    # BatchNorm1d (full-batch training-mode stats folded into scale/shift upstream).
    xn = x * scale_ref[...] + shift_ref[...]

    t = jnp.tanh(xn)
    t = jnp.clip(t, -1.0 + 1e-5, 1.0 - 1e-5)          # guarantees g in [0,19]

    xs = t * DELTA
    xl = jnp.floor(xs)                                # xh == xl + 1
    g = xl + DELTA                                    # knot index, integer-valued f32
    w_hi = xs - xl                                    # in [0, 1); w_lo = 1 - w_hi

    # Broadcast g / w_hi from the (TN, A) domain to the 168-lane block-diagonal
    # domain with two tiny MXU matmuls against a constant 0/1 selection matrix.
    # g is an exact small integer in bf16, so the compare below stays exact.
    sel = sel_ref[...]                                # (A, 168) bf16 {0,1}
    g_bc = jnp.dot(g.astype(jnp.bfloat16), sel,
                   preferred_element_type=jnp.float32)        # (TN, 168)
    w_hi_bc = jnp.dot(w_hi.astype(jnp.bfloat16), sel,
                      preferred_element_type=jnp.float32)     # (TN, 168)

    # Two-hot interpolation weights: w_lo at knot g, w_hi at knot g+1, 0 elsewhere.
    d = lane_g_ref[...] - g_bc                        # integer-valued f32
    w2 = jnp.where(d == 0.0, 1.0 - w_hi_bc,
                   jnp.where(d == 1.0, w_hi_bc, 0.0)).astype(jnp.bfloat16)

    # Single bf16 MXU pass against the block-diagonal table -> lane-dense (TN, 64).
    out_ref[...] = jnp.dot(w2, tbl_ref[...], preferred_element_type=jnp.float32)


@functools.partial(jax.jit, static_argnames=("tile_n",))
def spline_embedding_forward(x, tbl, gamma, beta, *, tile_n=1024):
    n, a = x.shape
    assert a == ACTIONS

    # ---- BatchNorm1d training-mode statistics over the FULL batch ----
    mean = jnp.mean(x, axis=0, keepdims=True)
    var = jnp.mean((x - mean) ** 2, axis=0, keepdims=True)    # biased, like torch BN
    scale = gamma * lax.rsqrt(var + EPS_BN)                   # (1, A)
    shift = beta - mean * scale                               # (1, A)
    # TODO(synk): torch BatchNorm1d also mutates running_mean/running_var buffers in
    # training mode; that stateful side effect is not reproduced (output unaffected).

    # ---- block-diagonal per-action bf16 table ----
    # row a*21+g holds tbl[ACTIONS*g + a] in output columns a*8:(a+1)*8, zero elsewhere.
    tbl_pa = tbl.reshape(GRID_PTS, ACTIONS, EMB).transpose(1, 0, 2)   # (A, G, E)
    eye_a = jnp.eye(ACTIONS, dtype=tbl.dtype)
    tbl_bd = jnp.einsum('age,ab->agbe', tbl_pa, eye_a).reshape(KDIM, NDIM)
    tbl_bd = tbl_bd.astype(jnp.bfloat16)                              # (168, 64)

    # 0/1 selection matrix broadcasting per-action scalars onto that action's 21
    # lanes, and the per-lane knot index.
    sel = jnp.repeat(jnp.eye(ACTIONS, dtype=jnp.float32), GRID_PTS, axis=1)
    sel = sel.astype(jnp.bfloat16)                                    # (8, 168)
    lane_g = jnp.tile(jnp.arange(GRID_PTS, dtype=jnp.float32),
                      ACTIONS)[None, :]                               # (1, 168)

    # ---- batch tiling: multiple of 8; keep >= 2 grid steps when possible (v7x) ----
    n8 = ((n + 7) // 8) * 8
    half = max(8, ((n8 // 2 + 7) // 8) * 8)
    tile = max(8, min((tile_n // 8) * 8, half))
    n_pad = ((n + tile - 1) // tile) * tile
    x_pad = jnp.pad(x, ((0, n_pad - n), (0, 0))) if n_pad != n else x
    grid = (n_pad // tile,)

    out = pl.pallas_call(
        spline_embedding_kernel,
        out_shape=jax.ShapeDtypeStruct((n_pad, NDIM), jnp.float32),
        grid=grid,
        in_specs=[
            pl.BlockSpec((tile, ACTIONS), lambda i: (i, 0)),     # x batch tile
            pl.BlockSpec((1, ACTIONS), lambda i: (0, 0)),        # BN scale (resident)
            pl.BlockSpec((1, ACTIONS), lambda i: (0, 0)),        # BN shift (resident)
            pl.BlockSpec((ACTIONS, KDIM), lambda i: (0, 0)),     # selection (resident)
            pl.BlockSpec((1, KDIM), lambda i: (0, 0)),           # lane knot idx (resident)
            pl.BlockSpec((KDIM, NDIM), lambda i: (0, 0)),        # bf16 table (resident)
        ],
        out_specs=pl.BlockSpec((tile, NDIM), lambda i: (i, 0)),  # lane-dense output
        compiler_params=pltpu.CompilerParams(
            dimension_semantics=("parallel",),      # v7x: shard batch across 2 TCs
            vmem_limit_bytes=32 * 1024 * 1024,
        ),
    )(x_pad, scale, shift, sel, lane_g, tbl_bd)

    return out[:n].reshape(n, ACTIONS, EMB)


def spline_embedding_reference(x, tbl, gamma, beta):
    """Pure-JAX f32 reference matching the PyTorch forward exactly."""
    mean = jnp.mean(x, axis=0, keepdims=True)
    var = jnp.mean((x - mean) ** 2, axis=0, keepdims=True)
    xn = (x - mean) / jnp.sqrt(var + EPS_BN) * gamma + beta
    t = jnp.clip(jnp.tanh(xn), -1.0 + 1e-5, 1.0 - 1e-5)
    xl = jnp.floor(t * DELTA)
    xh = jnp.floor(t * DELTA + 1.0)
    off = jnp.arange(ACTIONS, dtype=jnp.int32)[None, :]
    xli = ACTIONS * (xl.astype(jnp.int32) + DELTA) + off
    xhi = ACTIONS * (xh.astype(jnp.int32) + DELTA) + off
    bl = tbl[xli]                                   # (N, A, E)
    bh = tbl[xhi]
    xln = xl / DELTA
    xhn = xh / DELTA
    return bh * DELTA * (t - xln)[..., None] + bl * DELTA * (xhn - t)[..., None]


if __name__ == "__main__":
    key = jax.random.PRNGKey(0)
    k_tbl, k_x = jax.random.split(key)

    # Parameters of a fresh SplineEmbedding(actions=8, emb=8, delta=10):
    #   nn.Embedding default N(0,1); BatchNorm affine defaults gamma=1, beta=0.
    tbl = jax.random.normal(k_tbl, (TABLE, EMB), jnp.float32)
    gamma = jnp.ones((1, ACTIONS), jnp.float32)
    beta = jnp.zeros((1, ACTIONS), jnp.float32)

    batch = 20                                       # exercises padding + a 3-step grid
    x = jax.random.normal(k_x, (batch, ACTIONS), jnp.float32)

    ref = spline_embedding_reference(x, tbl, gamma, beta)

    # Small-tile run: exercises padding and a multi-step grid.
    h = spline_embedding_forward(x, tbl, gamma, beta, tile_n=8)
    h = jax.block_until_ready(h)
    assert h.shape == (batch, ACTIONS, EMB), h.shape
    assert bool(jnp.all(jnp.isfinite(h)))
    # Loose tolerance: the table and two-hot weights are rounded to bf16 at the MXU.
    assert bool(jnp.allclose(h, ref, atol=3e-2, rtol=3e-2)), float(
        jnp.max(jnp.abs(h - ref)))

    # Default (production) tile path.
    h2 = spline_embedding_forward(x, tbl, gamma, beta)
    h2 = jax.block_until_ready(h2)
    assert bool(jnp.allclose(h2, ref, atol=3e-2, rtol=3e-2)), float(
        jnp.max(jnp.abs(h2 - ref)))

    print("KERNEL_OK")
</pallas_src>

<mosaic_0001>
module attributes {stable_mosaic.version = 11 : i64} {
  func.func @spline_embedding_kernel(%arg0: i32, %arg1: memref<8x8xf32, #tpu.memory_space<vmem>>, %arg2: memref<1x8xf32, #tpu.memory_space<vmem>>, %arg3: memref<1x8xf32, #tpu.memory_space<vmem>>, %arg4: memref<8x168xbf16, #tpu.memory_space<vmem>>, %arg5: memref<1x168xf32, #tpu.memory_space<vmem>>, %arg6: memref<168x64xbf16, #tpu.memory_space<vmem>>, %arg7: memref<8x64xf32, #tpu.memory_space<vmem>>) attributes {dimension_semantics = [#tpu.dimension_semantics<parallel>], iteration_bounds = array<i64: 3>, scalar_prefetch = 0 : i64, scratch_operands = 0 : i64, tpu.core_type = #tpu.core_type<tc>, window_params = [{transform_indices = @transform_0, window_bounds = array<i64: 8, 8>}, {pipeline_mode = #tpu.pipeline_mode<synchronous>, transform_indices = @transform_1, window_bounds = array<i64: 1, 8>}, {pipeline_mode = #tpu.pipeline_mode<synchronous>, transform_indices = @transform_2, window_bounds = array<i64: 1, 8>}, {pipeline_mode = #tpu.pipeline_mode<synchronous>, transform_indices = @transform_3, window_bounds = array<i64: 8, 168>}, {pipeline_mode = #tpu.pipeline_mode<synchronous>, transform_indices = @transform_4, window_bounds = array<i64: 1, 168>}, {pipeline_mode = #tpu.pipeline_mode<synchronous>, transform_indices = @transform_5, window_bounds = array<i64: 168, 64>}, {transform_indices = @transform_6, window_bounds = array<i64: 8, 64>}]} {
    %c0 = arith.constant 0 : index
    %c0_0 = arith.constant 0 : index
    %0 = vector.load %arg1[%c0, %c0_0] : memref<8x8xf32, #tpu.memory_space<vmem>>, vector<8x8xf32>
    %c0_1 = arith.constant 0 : index
    %c0_2 = arith.constant 0 : index
    %1 = vector.load %arg2[%c0_1, %c0_2] : memref<1x8xf32, #tpu.memory_space<vmem>>, vector<1x8xf32>
    %2 = vector.broadcast %1 : vector<1x8xf32> to vector<8x8xf32>
    %3 = arith.mulf %0, %2 : vector<8x8xf32>
    %c0_3 = arith.constant 0 : index
    %c0_4 = arith.constant 0 : index
    %4 = vector.load %arg3[%c0_3, %c0_4] : memref<1x8xf32, #tpu.memory_space<vmem>>, vector<1x8xf32>
    %5 = vector.broadcast %4 : vector<1x8xf32> to vector<8x8xf32>
    %6 = arith.addf %3, %5 : vector<8x8xf32>
    %7 = math.tanh %6 : vector<8x8xf32>
    %cst = arith.constant -0.999989986 : f32
    %cst_5 = arith.constant 0.999989986 : f32
    %8 = vector.broadcast %cst : f32 to vector<8x8xf32>
    %9 = arith.maximumf %8, %7 : vector<8x8xf32>
    %10 = vector.broadcast %cst_5 : f32 to vector<8x8xf32>
    %11 = arith.minimumf %10, %9 : vector<8x8xf32>
    %cst_6 = arith.constant 1.000000e+01 : f32
    %12 = vector.broadcast %cst_6 : f32 to vector<8x8xf32>
    %13 = arith.mulf %11, %12 : vector<8x8xf32>
    %14 = math.floor %13 : vector<8x8xf32>
    %cst_7 = arith.constant 1.000000e+01 : f32
    %15 = vector.broadcast %cst_7 : f32 to vector<8x8xf32>
    %16 = arith.addf %14, %15 : vector<8x8xf32>
    %17 = arith.subf %13, %14 : vector<8x8xf32>
    %c0_8 = arith.constant 0 : index
    %c0_9 = arith.constant 0 : index
    %18 = vector.load %arg4[%c0_8, %c0_9] : memref<8x168xbf16, #tpu.memory_space<vmem>>, vector<8x168xbf16>
    %19 = arith.truncf %16 : vector<8x8xf32> to vector<8x8xbf16>
    %cst_10 = arith.constant dense<0.000000e+00> : vector<8x168xf32>
    %20 = tpu.matmul %19, %18, %cst_10 {dimension_numbers = #tpu.dot_dimension_numbers<[1], [0], [0], [1], [0, 0, 1, 1], [], []>} : vector<8x8xbf16>, vector<8x168xbf16>, vector<8x168xf32> -> vector<8x168xf32>
    %21 = arith.truncf %17 : vector<8x8xf32> to vector<8x8xbf16>
    %cst_11 = arith.constant dense<0.000000e+00> : vector<8x168xf32>
    %22 = tpu.matmul %21, %18, %cst_11 {dimension_numbers = #tpu.dot_dimension_numbers<[1], [0], [0], [1], [0, 0, 1, 1], [], []>} : vector<8x8xbf16>, vector<8x168xbf16>, vector<8x168xf32> -> vector<8x168xf32>
    %c0_12 = arith.constant 0 : index
    %c0_13 = arith.constant 0 : index
    %23 = vector.load %arg5[%c0_12, %c0_13] : memref<1x168xf32, #tpu.memory_space<vmem>>, vector<1x168xf32>
    %24 = vector.broadcast %23 : vector<1x168xf32> to vector<8x168xf32>
    %25 = arith.subf %24, %20 : vector<8x168xf32>
    %cst_14 = arith.constant 0.000000e+00 : f32
    %26 = vector.broadcast %cst_14 : f32 to vector<8x168xf32>
    %27 = arith.cmpf oeq, %25, %26 : vector<8x168xf32>
    %cst_15 = arith.constant 1.000000e+00 : f32
    %28 = vector.broadcast %cst_15 : f32 to vector<8x168xf32>
    %29 = arith.subf %28, %22 : vector<8x168xf32>
    %cst_16 = arith.constant 1.000000e+00 : f32
    %30 = vector.broadcast %cst_16 : f32 to vector<8x168xf32>
    %31 = arith.cmpf oeq, %25, %30 : vector<8x168xf32>
    %cst_17 = arith.constant 0.000000e+00 : f32
    %32 = vector.broadcast %cst_17 : f32 to vector<8x168xf32>
    %33 = arith.select %31, %22, %32 : vector<8x168xi1>, vector<8x168xf32>
    %34 = arith.select %27, %29, %33 : vector<8x168xi1>, vector<8x168xf32>
    %35 = arith.truncf %34 : vector<8x168xf32> to vector<8x168xbf16>
    %c0_18 = arith.constant 0 : index
    %c0_19 = arith.constant 0 : index
    %36 = vector.load %arg6[%c0_18, %c0_19] : memref<168x64xbf16, #tpu.memory_space<vmem>>, vector<168x64xbf16>
    %cst_20 = arith.constant dense<0.000000e+00> : vector<8x64xf32>
    %37 = tpu.matmul %35, %36, %cst_20 {dimension_numbers = #tpu.dot_dimension_numbers<[1], [0], [0], [1], [0, 0, 1, 1], [], []>} : vector<8x168xbf16>, vector<168x64xbf16>, vector<8x64xf32> -> vector<8x64xf32>
    %c0_21 = arith.constant 0 : index
    %c0_22 = arith.constant 0 : index
    %38 = vector.load %arg7[%c0_21, %c0_22] : memref<8x64xf32, #tpu.memory_space<vmem>>, vector<8x64xf32>
    tpu.vector_store %arg7[%c0_21, %c0_22], %37 {strides = array<i32>} : memref<8x64xf32, #tpu.memory_space<vmem>>, vector<8x64xf32>,
    return
  }
  func.func @transform_0(%arg0: i32) -> (i32, i32) {
    %c0_i32 = arith.constant 0 : i32
    %c0_i32_0 = arith.constant 0 : i32
    return %arg0, %c0_i32 : i32, i32
  }
  func.func @transform_1(%arg0: i32) -> (i32, i32) {
    %c0_i32 = arith.constant 0 : i32
    %c0_i32_0 = arith.constant 0 : i32
    %c0_i32_1 = arith.constant 0 : i32
    return %c0_i32, %c0_i32_0 : i32, i32
  }
  func.func @transform_2(%arg0: i32) -> (i32, i32) {
    %c0_i32 = arith.constant 0 : i32
    %c0_i32_0 = arith.constant 0 : i32
    %c0_i32_1 = arith.constant 0 : i32
    return %c0_i32, %c0_i32_0 : i32, i32
  }
  func.func @transform_3(%arg0: i32) -> (i32, i32) {
    %c0_i32 = arith.constant 0 : i32
    %c0_i32_0 = arith.constant 0 : i32
    %c0_i32_1 = arith.constant 0 : i32
    return %c0_i32, %c0_i32_0 : i32, i32
  }
  func.func @transform_4(%arg0: i32) -> (i32, i32) {
    %c0_i32 = arith.constant 0 : i32
    %c0_i32_0 = arith.constant 0 : i32
    %c0_i32_1 = arith.constant 0 : i32
    return %c0_i32, %c0_i32_0 : i32, i32
  }
  func.func @transform_5(%arg0: i32) -> (i32, i32) {
    %c0_i32 = arith.constant 0 : i32
    %c0_i32_0 = arith.constant 0 : i32
    %c0_i32_1 = arith.constant 0 : i32
    return %c0_i32, %c0_i32_0 : i32, i32
  }
  func.func @transform_6(%arg0: i32) -> (i32, i32) {
    %c0_i32 = arith.constant 0 : i32
    %c0_i32_0 = arith.constant 0 : i32
    return %arg0, %c0_i32 : i32, i32
  }
}

</mosaic_0001>

<bundles_post_ra>
// kernel: tile.9
= control target key start
LH: loop header
LB: loop body
LE: loop exit
PB: predicated region body
PF: predicated region fallthrough
CT: control target
= control target key end

     0   :  { %vm9_vm0 = vcmask 15360   ;;  %s82_s12 = smov 126   ;;  %s83_s13 = smov 84   ;;  %vm3_vm1 = vcmask 171008   ;;  %vm13_vm2 = vcmask 154624   ;;  %vm16_vm3 = vcmask 1048560   ;;  %s132_s0 = inlined_call_operand.vmem [shape: f32[8,21], index: 0, kind: input, shape index: {}]   ;;  %s133_s1 = inlined_call_operand.vmem [shape: f32[1,168], index: 1, kind: output, shape index: {}]  }
   0x1   :  { %v66_v0 = vld [vmem:[%s132_s0 + $0x6] sm:$0x1]   ;;  %v69_v3 = vld [vmem:[%s132_s0 + $0x4] sm:$0x1]   ;;  %v68_v4 = vld [vmem:[%s132_s0 + $0x5] sm:$0x1]  }
   0x2   :  { %v67_v1 = vld [vmem:[%s132_s0 + $0x6] sm:$0x1]   ;;  %26 = vrot.lane.b32.xlu1 %v69_v3, %s83_s13  ;;  %v70_v5 = vld [vmem:[%s132_s0 + $0x3] sm:$0x1]   ;;  %v2_v6 = vld [vmem:[%s132_s0] sm:$0x1]  }
   0x3   :  { %v10_v2 = vsel %vm9_vm0, %v67_v1, %v66_v0  ;;  %4 = vst.msk [vmem:[#allocation0] sm:$0x1] %vm3_vm1, %v2_v6   ;;  %s84_s20 = smov 105   ;;  %s85_s21 = smov 63   ;;  %v71_v7 = vld [vmem:[%s132_s0 + $0x2] sm:$0x1]  }
   0x4   :  { %11 = vrot.lane.b32.xlu0 %v10_v2, %s82_s12  ;;  %v72_v8 = vld [vmem:[%s132_s0 + $0x1] sm:$0x1]   ;;  %s86_s26 = smov 42   ;;  %s87_s27 = smov 21   ;;  %v73_v9 = vld [vmem:[%s132_s0 + $0x7] sm:$0x1]  }
   0x5   :  { %s88_s0 = smov 19   ;;  %vm22_vm4 = vcmask 1032008   ;;  %vm28_vm5 = vcmask 859808   ;;  %vm34_vm6 = vcmask 687608   ;;  %vm40_vm7 = vcmask 515408  }
   0x6   :  { %32 = vrot.lane.b32.xlu1 %v70_v5, %s85_s21  ;;  %vm46_vm8 = vcmask 343208   ;;  %vm52_vm9 = vcmask 326808  }
   0x8   :  { %20 = vrot.lane.b32.xlu0 %v68_v4, %s84_s20 }
   0xa   :  { %44 = vrot.lane.b32.xlu1 %v72_v8, %s87_s27 }
   0xc   :  { %38 = vrot.lane.b32.xlu0 %v71_v7, %s86_s26 }
  0x10   :  { %50 = vrot.lane.b32.xlu0 %v73_v9, %s88_s0 }
  0x74   :  { %v27_v11 = vpop.permute.xlu1 %26  }
  0x76   :  { %v12_v10 = vpop.permute.xlu0 %11  }
  0x77   :  { %15 = vst.msk [vmem:[#allocation0 + $0x8] sm:$0x1] %vm13_vm2, %v12_v10  }
  0x78   :  { %17 = vst.msk [vmem:[#allocation0] sm:$0x1] %vm16_vm3, %v12_v10   ;;  %v33_v13 = vpop.permute.xlu1 %32  }
  0x7a   :  { %v21_v12 = vpop.permute.xlu0 %20  }
  0x7b   :  { %23 = vst.msk [vmem:[#allocation0] sm:$0x1] %vm22_vm4, %v21_v12  }
  0x7c   :  { %29 = vst.msk [vmem:[#allocation0] sm:$0x1] %vm28_vm5, %v27_v11   ;;  %v45_v15 = vpop.permute.xlu1 %44  }
  0x7d   :  { %35 = vst.msk [vmem:[#allocation0] sm:$0x1] %vm34_vm6, %v33_v13  }
  0x7e   :  { %v39_v14 = vpop.permute.xlu0 %38  }
  0x7f   :  { %41 = vst.msk [vmem:[#allocation0] sm:$0x1] %vm40_vm7, %v39_v14  }
  0x80   :  { %47 = vst.msk [vmem:[#allocation0] sm:$0x1] %vm46_vm8, %v45_v15  }
  0x82   :  { %v51_v16 = vpop.permute.xlu0 %50  }
  0x83   :  { %54 = vst.msk [vmem:[#allocation0 + $0x8] sm:$0x1] %vm52_vm9, %v51_v16  }
  0x87   :  { %v58_v17 = vld [vmem:[#allocation0] sm:$0x1] }
  0x88   :  { %60 = vst [vmem:[%s133_s1] sm:$0x1] %v58_v17 }
  0x8a   :  { %v62_v18 = vld [vmem:[#allocation0 + $0x8] sm:$0x1] }
  0x8b   :  { %74 = vst [vmem:[%s133_s1 + $0x1] sm:$0x1] %v62_v18 }

// kernel: spline_embedding_forward.1
= control target key start
LH: loop header
LB: loop body
LE: loop exit
PB: predicated region body
PF: predicated region fallthrough
CT: control target
= control target key end

     0   :  { %s686_s21 = smov 0   ;;  %s759_s0 = inlined_call_operand.vmem [shape: f32[24,8], index: 0, kind: input, shape index: {}]   ;;  %s760_s1 = inlined_call_operand.vmem [shape: f32[1,8], index: 1, kind: input, shape index: {}]   ;;  %s761_s2 = inlined_call_operand.vmem [shape: f32[1,8], index: 2, kind: input, shape index: {}]   ;;  %s762_s3 = inlined_call_operand.vmem [shape: bf16[8,168], index: 3, kind: input, shape index: {}]   ;;  %s763_s4 = inlined_call_operand.vmem [shape: f32[1,168], index: 4, kind: input, shape index: {}]   ;;  %s764_s5 = inlined_call_operand.vmem [shape: bf16[168,64], index: 5, kind: input, shape index: {}]   ;;  %s765_s6 = inlined_call_operand.vmem [shape: f32[24,64], index: 6, kind: output, shape index: {}]  }
   0x1 LB: > { %s588_s22 = sadd.s32 4294967295, %s648_s21   ;;  %p592_p0 = scmp.ge.s32.totalorder %s648_s21, 1  ;;  %s648_s21 = sphi %s686_s21, %s16_s21  }
   0x2   : > { %p211_p1 = scmp.lt.s32.totalorder %s648_s21, 4 }
   0x4   : > { %p212_p2 = pnand %p592_p0, %p211_p1 }
   0x5   : > { %v272_v0 = vld [vmem:[%s762_s3] sm:$0xff] (!%p212_p2)  ;;  %vm283_vm0 = vcmask (!%p212_p2), 1043456   ;;  %p239_p3 = scmp.lt.s32.totalorder (!%p212_p2), %s588_s22, 2  ;;  %v650_v3 = vmov (!%p212_p2), 0   ;;  %v630_v7 = vld [vmem:[%s764_s5 + $0x8] sm:$0xff] (!%p212_p2)   ;;  %v631_v11 = vld [vmem:[%s764_s5 + $0x10] sm:$0xff] (!%p212_p2)   ;;  %v378_v30 = vlaneseq (!%p212_p2) }
   0x6   : > { %215 = sbr.rel (%p212_p2) target bundleno = 484 (0x1e4), region = 44  ;;  %v599_v1 = vcombine.high (!%p212_p2), %v272_v0, %v272_v0  ;;  %v598_v2 = vcombine.low (!%p212_p2), %v272_v0, %v272_v0  ;;  %322 = vmatprep.mubr.bf16.mxu1 (!%p212_p2), %v650_v3  ;;  %493 = vmatprep.subr.bf16.mxu0 (!%p212_p2), %v650_v3  ;;  %v629_v4 = vld [vmem:[%s764_s5] sm:$0xff] (!%p212_p2)   ;;  %v632_v13 = vld [vmem:[%s764_s5 + $0x18] sm:$0xff] (!%p212_p2)   ;;  %v634_v15 = vld [vmem:[%s764_s5 + $0x28] sm:$0xff] (!%p212_p2)   ;;  %vm279_vm1 = vcmask (!%p212_p2), 64512   ;;  %vm486_vm6 = vcmask (!%p212_p2), 326656  }
   0x7   : > { %v595_v5 = vld [vmem:[%s760_s1] ss:$0 sm:$0xff] (!%p212_p2)  ;;  %494 = vmatpush1.bf16.msra.mxu0 (!%p212_p2), %v629_v4  ;;  %v635_v18 = vld [vmem:[%s764_s5 + $0x30] sm:$0xff] (!%p212_p2)   ;;  %v636_v25 = vld [vmem:[%s764_s5 + $0x38] sm:$0xff] (!%p212_p2)   ;;  %v379_v31 = vshrl.u32 (!%p212_p2), %v378_v30, 7  ;;  %vm533_vm7 = vcmask (!%p212_p2), 523264  }
   0x8   : > { %600 = vmatprep.subr.msk.bf16.mxu1 (!%p212_p2), %vm283_vm0, %v599_v1  ;;  %v285_v6 = vsel (!%p212_p2), %vm283_vm0, %v598_v2, 0  ;;  %495 = vmatprep.subr.bf16.mxu0 (!%p212_p2), %v650_v3  ;;  %v596_v9 = vld [vmem:[%s761_s2] ss:$0 sm:$0xff] (!%p212_p2)  ;;  %v638_v27 = vld [vmem:[%s764_s5 + $0x48] sm:$0xff] (!%p212_p2)   ;;  %v639_v28 = vld [vmem:[%s764_s5 + $0x50] ss:$0 sps:$4 sm:$0xff] (!%p212_p2)  }
   0x9   : > { %291 = vmatpush1.bf16.msra.mxu1 (!%p212_p2), %v285_v6  ;;  %v633_v14 = vld [vmem:[%s764_s5 + $0x20] sm:$0xff] (!%p212_p2)   ;;  %v491_v29 = vsel (!%p212_p2), %vm283_vm0, %v639_v28, 0  ;;  %v380_v32 = vsub.s32 (!%p212_p2), 0, %v379_v31  ;;  %v384_v34 = vsub.s32 (!%p212_p2), 1, %v379_v31 }
   0xa   : > { %602 = vmatprep.subr.msk.bf16.mxu1 (!%p212_p2), %vm283_vm0, %v599_v1  ;;  %v637_v26 = vld [vmem:[%s764_s5 + $0x40] sm:$0xff] (!%p212_p2)  }
   0xb   : > { %496 = vmatpush1.bf16.msra.mxu0 (!%p212_p2), %v630_v7  ;;  %v376_v33 = vld [vmem:[%s763_s4] sm:$0x3] (!%p212_p2) }
   0xc   : > { %497 = vmatprep.subr.bf16.mxu0 (!%p212_p2), %v650_v3  ;;  %v381_v36 = vrot.slane (!%p212_p2), %v376_v33, %v380_v32  ;;  %v385_v38 = vrot.slane (!%p212_p2), %v376_v33, %v384_v34 }
   0xd   : > { %s767_s22 = smov (!%p239_p3, %s588_s22), 2 }
   0xe   : > { %s593_s7 = sshll.u32 %s767_s22, 3 }
   0xf   : > { %s242_s10 = scalar_lea.vmem %s759_s0, %s593_s7  ;;  %498 = vmatpush1.bf16.msra.mxu0 %v631_v11  ;;  %s246_s14 = scalar_lea.vmem %s765_s6, %s593_s7 }
  0x10   : > { %v248_v8 = vld [vmem:[%s242_s10] sm:$0xff]  ;;  %499 = vmatprep.subr.bf16.mxu0 %v650_v3 }
  0x11   : > { %v256_v10 = vmul.f32 %v595_v5, %v248_v8 }
  0x13   : > { %v264_v12 = vadd.f32 %v596_v9, %v256_v10  ;;  %500 = vmatpush1.bf16.msra.mxu0 %v632_v13 }
  0x14   : > { %501 = vmatprep.subr.bf16.mxu0 %v650_v3 }
  0x15   : > { %640 = vtanh.f32 %v264_v12 }
  0x17   : > { %502 = vmatpush1.bf16.msra.mxu0 %v633_v14 }
  0x18   : > { %503 = vmatprep.subr.bf16.mxu0 %v650_v3 }
  0x1b   : > { %504 = vmatpush1.bf16.msra.mxu0 %v634_v15 }
  0x1c   : > { %505 = vmatprep.subr.bf16.mxu0 %v650_v3 }
  0x1f   : > { %v641_v16 = vpop.eup %640  ;;  %506 = vmatpush1.bf16.msra.mxu0 %v635_v18 }
  0x20   : > { %v597_v17 = vclamps-f32 %v641_v16, 0.99999  ;;  %507 = vmatprep.subr.bf16.mxu0 %v650_v3 }
  0x22   : > { %v268_v19 = vmul.f32 10.0, %v597_v17 }
  0x23   : > { %508 = vmatpush1.bf16.msra.mxu0 %v636_v25 }
  0x24   : > { %v269_v20 = vfloor.f32 %v268_v19  ;;  %509 = vmatprep.subr.bf16.mxu0 %v650_v3 }
  0x26   : > { %v270_v21 = vadd.f32 10.0, %v269_v20  ;;  %v271_v23 = vsub.f32 %v268_v19, %v269_v20 }
  0x27   : > { %510 = vmatpush1.bf16.msra.mxu0 %v637_v26 }
  0x28   : > { %v273_v22 = vpack.c.bf16 %v270_v21, %v270_v21  ;;  %v331_v24 = vpack.c.bf16 %v271_v23, %v271_v23  ;;  %511 = vmatprep.subr.bf16.mxu0 %v650_v3 }
  0x2a   : > { %601 = vmatmul.mubr.msk.bf16.vlgmr.msra.gmra.mrb[0].mxu1 %vm279_vm1, %v273_v22 }
  0x2b   : > { %336 = vmatpush1.bf16.msra.mxu1 %v285_v6  ;;  %367 = vmatprep.mubr.bf16.mxu1 %v650_v3 }
  0x2c   : > { %512 = vmatpush1.bf16.msra.mxu0 %v638_v27 }
  0x2d   : > { %513 = vmatprep.subr.bf16.mxu0 %v650_v3 }
  0x30   : > { %514 = vmatpush1.bf16.msra.mxu0 %v491_v29 }
  0x32   : > { %603 = vmatmul.mubr.msk.bf16.vlgmr.msra.gmra.mrb[4].mxu1 %vm279_vm1, %v331_v24 }
  0xfd   : > { %v324_v35 = vpop.f32.mrb[0].mxu1 }
  0xfe   : > { %v326_v37 = vpop.f32.mrb[1].mxu1  ;;  %v388_v41 = vsub.f32 %v381_v36, %v324_v35 }
  0xff   : > { %v328_v39 = vpop.f32.mrb[2].mxu1  ;;  %v389_v42 = vsub.f32 %v385_v38, %v326_v37 }
 0x100   : > { %v329_v40 = vpop.f32.mrb[3].mxu1  ;;  %vm394_vm2 = vcmp.eq.f32.partialorder %v388_v41, 1.0  ;;  %vm390_vm4 = vcmp.eq.f32.partialorder %v388_v41, 0.0 }
 0x101   : > { %vm395_vm3 = vcmp.eq.f32.partialorder %v389_v42, 1.0  ;;  %vm391_vm5 = vcmp.eq.f32.partialorder %v389_v42, 0.0 }
 0x105   : > { %v369_v43 = vpop.f32.mrb[4].mxu1 }
 0x106   : > { %v392_v44 = vsub.f32 1.0, %v369_v43  ;;  %v396_v45 = vsel %vm394_vm2, %v369_v43, 0.0  ;;  %v371_v46 = vpop.f32.mrb[5].mxu1 }
 0x107   : > { %v393_v47 = vsub.f32 1.0, %v371_v46  ;;  %v397_v48 = vsel %vm395_vm3, %v371_v46, 0.0  ;;  %v373_v49 = vpop.f32.mrb[6].mxu1 }
 0x108   : > { %v398_v50 = vsel %vm390_vm4, %v392_v44, %v396_v45  ;;  %v374_v51 = vpop.f32.mrb[7].mxu1 }
 0x109   : > { %v399_v52 = vsel %vm391_vm5, %v393_v47, %v397_v48  ;;  %v400_v54 = vpack.c.bf16 %v398_v50, %v398_v50 }
 0x10a   : > { %v401_v53 = vpack.c.bf16 %v399_v52, %v399_v52 }
 0x10c   : > { %615 = vmatprep.mubr.msk.bf16.mxu0 %vm486_vm6, %v401_v53 }
 0x10d   : > { %526 = vmatmul.mubr.bf16.vlgmr.msra.gmra.mrb[0].mxu0 %v400_v54 }
 0x1e0   : > { %v527_v55 = vpop.f32.mrb[0].mxu0 }
 0x1e1   : > { %534 = vst.msk [vmem:[%s246_s14] sm:$0xff] %vm533_vm7, %v527_v55  ;;  %v529_v56 = vpop.f32.mrb[1].mxu0 }
 0x1e2   : > { %v530_v57 = vpop.f32.mrb[2].mxu0 }
 0x1e3   : > { %v531_v58 = vpop.f32.mrb[3].mxu0 }
 0x1e4 PF: > { %s16_s21 = sadd.s32 1, %s648_s21  }
 0x1e5   : > { %p13_p4 = scmp.ge.s32.totalorder %s16_s21, 5  }
 0x1e7   :  { %15 = sbr.rel (!%p13_p4) target bundleno = 1 (0x1), region = 74 }

</bundles_post_ra>
